<compile_context>
chip_gen: v7x
topology: tpu7x:2x2x1
jax: 0.10.0
libtpu: 0.0.40
codegen_flags: <defaults>
</compile_context>

<pallas_src>
import functools

import jax
import jax.numpy as jnp
import numpy as np
from jax import lax
from jax.experimental import pallas as pl
from jax.experimental.pallas import tpu as pltpu

_NEG = -1e30   # "minus infinity" sentinel for extracted / masked-out entries
_CHUNK = 8     # rows processed per inner iteration (one sublane group)


def _term(scheme, d):
    if scheme == "Naive":
        return (1.0 + d) ** 2
    if scheme == "NaiveExp":
        return jnp.exp(d)
    if scheme == "NaiveLogit":
        return jnp.log(1.0 + jnp.exp(d))      # keep torch's exact form
    if scheme == "NaiveHinge":
        return jnp.maximum(1.0 + d, 0.0)
    raise ValueError(f"unsupported weight_scheme: {scheme}")


# ----------------------------------------------------------------------------
# Main AUTKC kernel (epoch >= epoch_to_paced path)
# ----------------------------------------------------------------------------
def _autkc_kernel(pred_ref, y_ref, out_ref, acc_ref, *, K, scheme,
                  apply_softmax, n_valid, final_scale, n_iters,
                  tiles_per_core, exact_ties):
    TB, C = pred_ref.shape
    t = pl.program_id(1)

    @pl.when(t == 0)
    def _():
        acc_ref[...] = jnp.zeros_like(acc_ref)

    # loop-invariant broadcasts, hoisted out of the chunk loop
    cols = lax.broadcasted_iota(jnp.int32, (_CHUNK, C), 1)
    row_iota = lax.broadcasted_iota(jnp.int32, (_CHUNK, 1), 0)
    tile_base = (pl.program_id(0) * tiles_per_core + t) * TB

    def chunk_body(c, acc):
        r0 = pl.multiple_of(c * _CHUNK, _CHUNK)
        x = pred_ref[pl.ds(r0, _CHUNK), :].astype(jnp.float32)   # (8, C)
        yv = y_ref[pl.ds(r0, _CHUNK), :]                         # (8, 1)
        pos = cols == yv                                         # one-hot mask

        if apply_softmax:
            # softmax monotonicity: extract top-(K+1) on e = exp(x - m) and
            # normalize only the (8,1) scalars that feed the loss term.
            m = jnp.max(x, axis=-1, keepdims=True)
            v = jnp.exp(x - m)
            s = jnp.sum(v, axis=-1, keepdims=True)
            r = pl.reciprocal(s, approx=True)      # EUP slot (otherwise idle)
            scale = r * (2.0 - s * r)              # one Newton step -> ~f32
        else:
            v = x
            scale = None

        v_p = jnp.sum(jnp.where(pos, v, 0.0), axis=-1, keepdims=True)  # (8,1)
        neg = jnp.where(pos, _NEG, v)                                  # (8,C)

        def step(carry):
            neg, loss = carry
            mx = jnp.max(neg, axis=-1, keepdims=True)   # one cross-lane reduce
            d = mx - v_p
            if scale is not None:
                d = d * scale
            term = _term(scheme, d)
            if exact_ties:
                # bit-exact torch.sort duplicate handling: remove exactly the
                # first occurrence (second cross-lane reduce per iteration).
                is_max = neg == mx
                idx = jnp.min(jnp.where(is_max, cols, C), axis=-1,
                              keepdims=True)
                neg = jnp.where(cols == idx, _NEG, neg)
            else:
                # fast path: drop ALL lanes equal to the max; guard rows that
                # exhausted their distinct negatives (contribute 0 after).
                term = jnp.where(mx > _NEG * 0.5, term, 0.0)
                neg = jnp.where(neg == mx, _NEG, neg)
            return neg, loss + term

        loss = jnp.zeros((_CHUNK, 1), jnp.float32)
        if n_iters <= 8:
            carry = (neg, loss)
            for _ in range(n_iters):            # short K: unroll statically
                carry = step(carry)
            loss = carry[1]
        else:
            _, loss = lax.fori_loop(0, n_iters, lambda i, cr: step(cr),
                                    (neg, loss))

        # mask rows past the real batch (ragged last tile / duplicate tiles),
        # using a select so garbage padding rows cannot propagate inf/NaN.
        g = tile_base + r0 + row_iota
        loss = jnp.where(g < n_valid, loss, 0.0)
        return acc + loss

    acc = lax.fori_loop(0, TB // _CHUNK, chunk_body,
                        jnp.zeros((_CHUNK, 1), jnp.float32))
    acc_ref[...] += acc

    @pl.when(t == pl.num_programs(1) - 1)
    def _():
        out_ref[0] = (jnp.sum(acc_ref[...], axis=0, keepdims=True)
                      * final_scale)


# ----------------------------------------------------------------------------
# Paced path: plain cross-entropy (mean over batch)
# ----------------------------------------------------------------------------
def _ce_kernel(pred_ref, y_ref, out_ref, acc_ref, *, n_valid, final_scale,
               tiles_per_core):
    TB, C = pred_ref.shape
    t = pl.program_id(1)

    @pl.when(t == 0)
    def _():
        acc_ref[...] = jnp.zeros_like(acc_ref)

    cols = lax.broadcasted_iota(jnp.int32, (_CHUNK, C), 1)
    row_iota = lax.broadcasted_iota(jnp.int32, (_CHUNK, 1), 0)
    tile_base = (pl.program_id(0) * tiles_per_core + t) * TB

    def chunk_body(c, acc):
        r0 = pl.multiple_of(c * _CHUNK, _CHUNK)
        x = pred_ref[pl.ds(r0, _CHUNK), :].astype(jnp.float32)
        yv = y_ref[pl.ds(r0, _CHUNK), :]
        m = jnp.max(x, axis=-1, keepdims=True)
        lse = m + jnp.log(jnp.sum(jnp.exp(x - m), axis=-1, keepdims=True))
        p = jnp.sum(jnp.where(cols == yv, x, 0.0), axis=-1, keepdims=True)
        g = tile_base + r0 + row_iota
        return acc + jnp.where(g < n_valid, lse - p, 0.0)

    acc = lax.fori_loop(0, TB // _CHUNK, chunk_body,
                        jnp.zeros((_CHUNK, 1), jnp.float32))
    acc_ref[...] += acc

    @pl.when(t == pl.num_programs(1) - 1)
    def _():
        out_ref[0] = (jnp.sum(acc_ref[...], axis=0, keepdims=True)
                      * final_scale)


# ----------------------------------------------------------------------------
# Wrapper (mirrors AUTKCLoss.forward)
# ----------------------------------------------------------------------------
def _round_up(x, m):
    return ((x + m - 1) // m) * m


def _cdiv(a, b):
    return -(-a // b)


def _chip_config():
    """Generation-gated (n_cores, total block VMEM budget, vmem_limit)."""
    kind = ""
    try:
        kind = jax.devices()[0].device_kind.lower()
    except Exception:
        pass
    if "v7" in kind:
        # v7x: 2 TCs/chip, 64 MiB physical VMEM -> conservative blocks.
        return 2, 6 * 1024 * 1024, 32 * 1024 * 1024
    # v5e / v6e: 1 TC/chip, 128 MiB physical VMEM -> bigger blocks.
    return 1, 16 * 1024 * 1024, 64 * 1024 * 1024


def autkc_loss(pred, y, *, weight_scheme, K, epoch_to_paced, epoch=0,
               tb=None, n_cores=None, exact_ties=False):
    B, C = pred.shape
    auto_cores, block_budget, vmem_limit = _chip_config()
    if n_cores is None:
        n_cores = auto_cores

    # labels: tiny reshape only (no copy of the big logits array, no upcast)
    y2 = jnp.asarray(y, jnp.int32).reshape(B, 1)
    itemsize = jnp.dtype(pred.dtype).itemsize

    # ---- batch tile: sized by VMEM bytes (dbl-buffered pred + lane-padded y),
    #      multiple of 8; chunked kernel keeps temporaries chunk-sized ----
    if tb is None:
        per_row = 2 * (C * itemsize + 512)
        tb = max(8, block_budget // per_row)
        tb = min(tb, 8192)
    tb = max(8, (tb // 8) * 8)
    rows_per_core = _cdiv(B, n_cores)
    tb = min(tb, _round_up(rows_per_core, 8))
    tiles_per_core = _cdiv(rows_per_core, tb)
    n_blocks = _cdiv(B, tb)          # real data blocks (ragged tail masked)

    def in_map(p, t):
        # clamp fully-out-of-range tiles (possible when n_cores=2 and the tile
        # count is odd); their rows are masked in-kernel via g < n_valid.
        return (jnp.minimum(p * tiles_per_core + t, n_blocks - 1), 0)

    if epoch < epoch_to_paced:
        # TODO(synk): torch prints 'paced..' here; host print omitted.
        kernel = functools.partial(
            _ce_kernel, n_valid=B, final_scale=1.0 / B,
            tiles_per_core=tiles_per_core)
    else:
        if weight_scheme not in ("Naive", "NaiveExp", "NaiveLogit",
                                 "NaiveHinge"):
            raise ValueError(f"unsupported weight_scheme: {weight_scheme}")
        kernel = functools.partial(
            _autkc_kernel,
            K=K,
            scheme=weight_scheme,
            # replicate the torch check verbatim ('Naive_hinge' never matches,
            # so softmax is always applied - same as the reference module).
            apply_softmax=(weight_scheme != "Naive_hinge"),
            n_valid=B,
            final_scale=1.0 / (K * B),
            n_iters=min(K + 1, C - 1),
            tiles_per_core=tiles_per_core,
            exact_ties=exact_ties,
        )

    out = pl.pallas_call(
        kernel,
        out_shape=jax.ShapeDtypeStruct((n_cores, 1, 1), jnp.float32),
        grid_spec=pltpu.PrefetchScalarGridSpec(
            num_scalar_prefetch=0,
            grid=(n_cores, tiles_per_core),
            in_specs=[
                pl.BlockSpec((tb, C), in_map),
                pl.BlockSpec((tb, 1), in_map),
            ],
            out_specs=pl.BlockSpec((1, 1, 1), lambda p, t: (p, 0, 0)),
            scratch_shapes=[pltpu.VMEM((_CHUNK, 1), jnp.float32)],
        ),
        compiler_params=pltpu.CompilerParams(
            dimension_semantics=("parallel", "arbitrary"),
            vmem_limit_bytes=vmem_limit,
        ),
    )(pred, y2)

    # per-core partial sums -> scalar loss
    return jnp.sum(out)


# ----------------------------------------------------------------------------
# Pure-JAX references (for correctness check only)
# ----------------------------------------------------------------------------
def _autkc_ref(pred, y, weight_scheme, K):
    B, C = pred.shape
    pred = pred.astype(jnp.float32)
    if weight_scheme != "Naive_hinge":         # literal torch check
        pred = jax.nn.softmax(pred, axis=-1)
    pred_p = jnp.take_along_axis(pred, y[:, None], axis=1)           # (B, 1)
    mask = jax.nn.one_hot(y, C, dtype=bool)
    pred_n = pred[~mask].reshape(B, C - 1)
    top = jnp.sort(pred_n, axis=-1)[:, ::-1][:, : K + 1]
    d = top - pred_p
    if weight_scheme == "Naive":
        loss = (1.0 + d) ** 2
    elif weight_scheme == "NaiveExp":
        loss = jnp.exp(d)
    elif weight_scheme == "NaiveLogit":
        loss = jnp.log(1.0 + jnp.exp(d))
    elif weight_scheme == "NaiveHinge":
        loss = jnp.maximum(1.0 + d, 0.0)
    return (loss.sum(-1) / K).mean()


def _ce_ref(pred, y):
    logp = jax.nn.log_softmax(pred.astype(jnp.float32), axis=-1)
    return -jnp.take_along_axis(logp, y[:, None], axis=1).mean()


if __name__ == "__main__":
    C, K = 32, 3
    epoch_to_paced = 2

    key = jax.random.PRNGKey(0)
    kp, ky = jax.random.split(key)
    pred16 = jax.random.normal(kp, (16, C), dtype=jnp.float32)
    y16 = jax.random.randint(ky, (16,), 0, C, dtype=jnp.int32)

    # (1) main AUTKC path (fast single-reduce tie handling).  Tolerance is
    # loosened vs a pure-f32 softmax because of the approx reciprocal+Newton.
    loss = autkc_loss(pred16, y16, weight_scheme="Naive", K=K,
                      epoch_to_paced=epoch_to_paced, epoch=5)
    jax.block_until_ready(loss)
    np.testing.assert_allclose(np.asarray(loss),
                               np.asarray(_autkc_ref(pred16, y16, "Naive", K)),
                               rtol=1e-3, atol=1e-5)

    # (2) paced path: epoch < epoch_to_paced (cross-entropy)
    loss_paced = autkc_loss(pred16, y16, weight_scheme="Naive", K=K,
                            epoch_to_paced=epoch_to_paced, epoch=0)
    jax.block_until_ready(loss_paced)
    np.testing.assert_allclose(np.asarray(loss_paced),
                               np.asarray(_ce_ref(pred16, y16)),
                               rtol=1e-5, atol=1e-6)

    # (3) exact duplicate handling + non-multiple-of-8 batch (exercises the
    #     un-padded ragged last tile masking path)
    pred13, y13 = pred16[:13], y16[:13]
    loss_exact = autkc_loss(pred13, y13, weight_scheme="NaiveHinge", K=K,
                            epoch_to_paced=epoch_to_paced, epoch=3,
                            exact_ties=True)
    jax.block_until_ready(loss_exact)
    np.testing.assert_allclose(
        np.asarray(loss_exact),
        np.asarray(_autkc_ref(pred13, y13, "NaiveHinge", K)),
        rtol=1e-3, atol=1e-5)

    # (4) large K -> fori_loop extraction path inside the chunk loop
    loss_bigk = autkc_loss(pred16, y16, weight_scheme="NaiveExp", K=10,
                           epoch_to_paced=epoch_to_paced, epoch=3)
    jax.block_until_ready(loss_bigk)
    np.testing.assert_allclose(
        np.asarray(loss_bigk),
        np.asarray(_autkc_ref(pred16, y16, "NaiveExp", 10)),
        rtol=1e-3, atol=1e-5)

    # (5) native-dtype (bf16) input: no wrapper upcast, cast happens in-kernel
    pred_bf16 = pred16.astype(jnp.bfloat16)
    loss_bf16 = autkc_loss(pred_bf16, y16, weight_scheme="Naive", K=K,
                           epoch_to_paced=epoch_to_paced, epoch=5)
    jax.block_until_ready(loss_bf16)
    np.testing.assert_allclose(
        np.asarray(loss_bf16),
        np.asarray(_autkc_ref(pred_bf16, y16, "Naive", K)),
        rtol=2e-3, atol=1e-4)

    print("KERNEL_OK")
</pallas_src>

<mosaic_0001>
module attributes {stable_mosaic.version = 11 : i64} {
  func.func @_autkc_kernel(%arg0: i32, %arg1: i32, %arg2: memref<16x32xf32, #tpu.memory_space<vmem>>, %arg3: memref<16x1xi32, #tpu.memory_space<vmem>>, %arg4: memref<1x1x1xf32, #tpu.memory_space<vmem>>, %arg5: memref<8x1xf32, #tpu.memory_space<vmem>>) attributes {dimension_semantics = [#tpu.dimension_semantics<parallel>, #tpu.dimension_semantics<arbitrary>], iteration_bounds = array<i64: 1, 1>, scalar_prefetch = 0 : i64, scratch_operands = 1 : i64, tpu.core_type = #tpu.core_type<tc>, window_params = [{transform_indices = @transform_0, window_bounds = array<i64: 16, 32>}, {transform_indices = @transform_1, window_bounds = array<i64: 16, 1>}, {transform_indices = @transform_2, window_bounds = array<i64: 1, 1, 1>}]} {
    %c0_i32 = arith.constant 0 : i32
    %0 = arith.cmpi eq, %arg1, %c0_i32 : i32
    %1 = arith.extui %0 : i1 to i32
    %c0_i32_0 = arith.constant 0 : i32
    %2 = arith.cmpi ne, %1, %c0_i32_0 : i32
    scf.if %2 {
      %cst_9 = arith.constant 0.000000e+00 : f32
      %17 = vector.broadcast %cst_9 : f32 to vector<8x1xf32>
      %c0_10 = arith.constant 0 : index
      %c0_11 = arith.constant 0 : index
      %18 = vector.load %arg5[%c0_10, %c0_11] : memref<8x1xf32, #tpu.memory_space<vmem>>, vector<8x1xf32>
      tpu.vector_store %arg5[%c0_10, %c0_11], %17 {strides = array<i32>} : memref<8x1xf32, #tpu.memory_space<vmem>>, vector<8x1xf32>,
    } else {
    }
    %3 = tpu.iota {dimensions = array<i32: 1>} : vector<8x32xi32>
    %4 = tpu.iota {dimensions = array<i32: 0>} : vector<8x1xi32>
    %c1_i32 = arith.constant 1 : i32
    %5 = arith.muli %arg0, %c1_i32 : i32
    %6 = arith.addi %5, %arg1 : i32
    %c16_i32 = arith.constant 16 : i32
    %7 = arith.muli %6, %c16_i32 : i32
    %cst = arith.constant 0.000000e+00 : f32
    %8 = vector.broadcast %cst : f32 to vector<8x1xf32>
    %c0_i32_1 = arith.constant 0 : i32
    %c2_i32 = arith.constant 2 : i32
    %9 = arith.addi %c0_i32_1, %c2_i32 : i32
    %c1_i32_2 = arith.constant 1 : i32
    %10 = scf.for %arg6 = %c0_i32_1 to %9 step %c1_i32_2 iter_args(%arg7 = %8) -> (vector<8x1xf32>)  : i32 {
      %c8_i32 = arith.constant 8 : i32
      %17 = arith.muli %arg6, %c8_i32 : i32
      %18 = tpu.assume_multiple %17, 8 : i32
      %19 = arith.index_cast %18 : i32 to index
      %c0_9 = arith.constant 0 : index
      %20 = vector.load %arg2[%19, %c0_9] : memref<16x32xf32, #tpu.memory_space<vmem>>, vector<8x32xf32>
      %21 = arith.index_cast %18 : i32 to index
      %c0_10 = arith.constant 0 : index
      %22 = vector.load %arg3[%21, %c0_10] : memref<16x1xi32, #tpu.memory_space<vmem>>, vector<8x1xi32>
      %23 = vector.broadcast %22 : vector<8x1xi32> to vector<8x32xi32>
      %24 = arith.cmpi eq, %3, %23 : vector<8x32xi32>
      %cst_11 = arith.constant dense<0xFF800000> : vector<8xf32>
      %25 = vector.multi_reduction <maximumf>, %20, %cst_11 [1] : vector<8x32xf32> to vector<8xf32>
      %26 = vector.shape_cast %25 : vector<8xf32> to vector<8x1xf32>
      %27 = vector.broadcast %26 : vector<8x1xf32> to vector<8x32xf32>
      %28 = arith.subf %20, %27 : vector<8x32xf32>
      %29 = math.exp %28 : vector<8x32xf32>
      %cst_12 = arith.constant dense<0.000000e+00> : vector<8xf32>
      %30 = vector.multi_reduction <add>, %29, %cst_12 [1] : vector<8x32xf32> to vector<8xf32>
      %31 = vector.shape_cast %30 : vector<8xf32> to vector<8x1xf32>
      %32 = tpu.reciprocal %31 {approx = true} : vector<8x1xf32> -> vector<8x1xf32>
      %33 = arith.mulf %31, %32 : vector<8x1xf32>
      %cst_13 = arith.constant 2.000000e+00 : f32
      %34 = vector.broadcast %cst_13 : f32 to vector<8x1xf32>
      %35 = arith.subf %34, %33 : vector<8x1xf32>
      %36 = arith.mulf %32, %35 : vector<8x1xf32>
      %cst_14 = arith.constant 0.000000e+00 : f32
      %37 = vector.broadcast %cst_14 : f32 to vector<8x32xf32>
      %38 = arith.select %24, %29, %37 : vector<8x32xi1>, vector<8x32xf32>
      %cst_15 = arith.constant dense<0.000000e+00> : vector<8xf32>
      %39 = vector.multi_reduction <add>, %38, %cst_15 [1] : vector<8x32xf32> to vector<8xf32>
      %40 = vector.shape_cast %39 : vector<8xf32> to vector<8x1xf32>
      %cst_16 = arith.constant -1.000000e+30 : f32
      %41 = vector.broadcast %cst_16 : f32 to vector<8x32xf32>
      %42 = arith.select %24, %41, %29 : vector<8x32xi1>, vector<8x32xf32>
      %cst_17 = arith.constant 0.000000e+00 : f32
      %43 = vector.broadcast %cst_17 : f32 to vector<8x1xf32>
      %cst_18 = arith.constant dense<0xFF800000> : vector<8xf32>
      %44 = vector.multi_reduction <maximumf>, %42, %cst_18 [1] : vector<8x32xf32> to vector<8xf32>
      %45 = vector.shape_cast %44 : vector<8xf32> to vector<8x1xf32>
      %46 = arith.subf %45, %40 : vector<8x1xf32>
      %47 = arith.mulf %46, %36 : vector<8x1xf32>
      %cst_19 = arith.constant 1.000000e+00 : f32
      %48 = vector.broadcast %cst_19 : f32 to vector<8x1xf32>
      %49 = arith.addf %48, %47 : vector<8x1xf32>
      %50 = arith.mulf %49, %49 : vector<8x1xf32>
      %cst_20 = arith.constant -5.000000e+29 : f32
      %51 = vector.broadcast %cst_20 : f32 to vector<8x1xf32>
      %52 = arith.cmpf ogt, %45, %51 : vector<8x1xf32>
      %cst_21 = arith.constant 0.000000e+00 : f32
      %53 = vector.broadcast %cst_21 : f32 to vector<8x1xf32>
      %54 = arith.select %52, %50, %53 : vector<8x1xi1>, vector<8x1xf32>
      %55 = vector.broadcast %45 : vector<8x1xf32> to vector<8x32xf32>
      %56 = arith.cmpf oeq, %42, %55 : vector<8x32xf32>
      %cst_22 = arith.constant -1.000000e+30 : f32
      %57 = vector.broadcast %cst_22 : f32 to vector<8x32xf32>
      %58 = arith.select %56, %57, %42 : vector<8x32xi1>, vector<8x32xf32>
      %59 = arith.addf %43, %54 : vector<8x1xf32>
      %cst_23 = arith.constant dense<0xFF800000> : vector<8xf32>
      %60 = vector.multi_reduction <maximumf>, %58, %cst_23 [1] : vector<8x32xf32> to vector<8xf32>
      %61 = vector.shape_cast %60 : vector<8xf32> to vector<8x1xf32>
      %62 = arith.subf %61, %40 : vector<8x1xf32>
      %63 = arith.mulf %62, %36 : vector<8x1xf32>
      %cst_24 = arith.constant 1.000000e+00 : f32
      %64 = vector.broadcast %cst_24 : f32 to vector<8x1xf32>
      %65 = arith.addf %64, %63 : vector<8x1xf32>
      %66 = arith.mulf %65, %65 : vector<8x1xf32>
      %cst_25 = arith.constant -5.000000e+29 : f32
      %67 = vector.broadcast %cst_25 : f32 to vector<8x1xf32>
      %68 = arith.cmpf ogt, %61, %67 : vector<8x1xf32>
      %cst_26 = arith.constant 0.000000e+00 : f32
      %69 = vector.broadcast %cst_26 : f32 to vector<8x1xf32>
      %70 = arith.select %68, %66, %69 : vector<8x1xi1>, vector<8x1xf32>
      %71 = vector.broadcast %61 : vector<8x1xf32> to vector<8x32xf32>
      %72 = arith.cmpf oeq, %58, %71 : vector<8x32xf32>
      %cst_27 = arith.constant -1.000000e+30 : f32
      %73 = vector.broadcast %cst_27 : f32 to vector<8x32xf32>
      %74 = arith.select %72, %73, %58 : vector<8x32xi1>, vector<8x32xf32>
      %75 = arith.addf %59, %70 : vector<8x1xf32>
      %cst_28 = arith.constant dense<0xFF800000> : vector<8xf32>
      %76 = vector.multi_reduction <maximumf>, %74, %cst_28 [1] : vector<8x32xf32> to vector<8xf32>
      %77 = vector.shape_cast %76 : vector<8xf32> to vector<8x1xf32>
      %78 = arith.subf %77, %40 : vector<8x1xf32>
      %79 = arith.mulf %78, %36 : vector<8x1xf32>
      %cst_29 = arith.constant 1.000000e+00 : f32
      %80 = vector.broadcast %cst_29 : f32 to vector<8x1xf32>
      %81 = arith.addf %80, %79 : vector<8x1xf32>
      %82 = arith.mulf %81, %81 : vector<8x1xf32>
      %cst_30 = arith.constant -5.000000e+29 : f32
      %83 = vector.broadcast %cst_30 : f32 to vector<8x1xf32>
      %84 = arith.cmpf ogt, %77, %83 : vector<8x1xf32>
      %cst_31 = arith.constant 0.000000e+00 : f32
      %85 = vector.broadcast %cst_31 : f32 to vector<8x1xf32>
      %86 = arith.select %84, %82, %85 : vector<8x1xi1>, vector<8x1xf32>
      %87 = vector.broadcast %77 : vector<8x1xf32> to vector<8x32xf32>
      %88 = arith.cmpf oeq, %74, %87 : vector<8x32xf32>
      %cst_32 = arith.constant -1.000000e+30 : f32
      %89 = vector.broadcast %cst_32 : f32 to vector<8x32xf32>
      %90 = arith.select %88, %89, %74 : vector<8x32xi1>, vector<8x32xf32>
      %91 = arith.addf %75, %86 : vector<8x1xf32>
      %cst_33 = arith.constant dense<0xFF800000> : vector<8xf32>
      %92 = vector.multi_reduction <maximumf>, %90, %cst_33 [1] : vector<8x32xf32> to vector<8xf32>
      %93 = vector.shape_cast %92 : vector<8xf32> to vector<8x1xf32>
      %94 = arith.subf %93, %40 : vector<8x1xf32>
      %95 = arith.mulf %94, %36 : vector<8x1xf32>
      %cst_34 = arith.constant 1.000000e+00 : f32
      %96 = vector.broadcast %cst_34 : f32 to vector<8x1xf32>
      %97 = arith.addf %96, %95 : vector<8x1xf32>
      %98 = arith.mulf %97, %97 : vector<8x1xf32>
      %cst_35 = arith.constant -5.000000e+29 : f32
      %99 = vector.broadcast %cst_35 : f32 to vector<8x1xf32>
      %100 = arith.cmpf ogt, %93, %99 : vector<8x1xf32>
      %cst_36 = arith.constant 0.000000e+00 : f32
      %101 = vector.broadcast %cst_36 : f32 to vector<8x1xf32>
      %102 = arith.select %100, %98, %101 : vector<8x1xi1>, vector<8x1xf32>
      %103 = arith.addf %91, %102 : vector<8x1xf32>
      %104 = arith.addi %7, %18 : i32
      %105 = vector.broadcast %104 : i32 to vector<8x1xi32>
      %106 = arith.addi %105, %4 : vector<8x1xi32>
      %c16_i32_37 = arith.constant 16 : i32
      %107 = vector.broadcast %c16_i32_37 : i32 to vector<8x1xi32>
      %108 = arith.cmpi slt, %106, %107 : vector<8x1xi32>
      %cst_38 = arith.constant 0.000000e+00 : f32
      %109 = vector.broadcast %cst_38 : f32 to vector<8x1xf32>
      %110 = arith.select %108, %103, %109 : vector<8x1xi1>, vector<8x1xf32>
      %111 = arith.addf %arg7, %110 : vector<8x1xf32>
      scf.yield %111 : vector<8x1xf32>
    }
    %c2_i32_3 = arith.constant 2 : i32
    %c0 = arith.constant 0 : index
    %c0_4 = arith.constant 0 : index
    %11 = vector.load %arg5[%c0, %c0_4] : memref<8x1xf32, #tpu.memory_space<vmem>>, vector<8x1xf32>
    %12 = arith.addf %11, %10 : vector<8x1xf32>
    %c0_5 = arith.constant 0 : index
    %c0_6 = arith.constant 0 : index
    %13 = vector.load %arg5[%c0_5, %c0_6] : memref<8x1xf32, #tpu.memory_space<vmem>>, vector<8x1xf32>
    tpu.vector_store %arg5[%c0_5, %c0_6], %12 {strides = array<i32>} : memref<8x1xf32, #tpu.memory_space<vmem>>, vector<8x1xf32>,
    %c0_i32_7 = arith.constant 0 : i32
    %14 = arith.cmpi eq, %arg1, %c0_i32_7 : i32
    %15 = arith.extui %14 : i1 to i32
    %c0_i32_8 = arith.constant 0 : i32
    %16 = arith.cmpi ne, %15, %c0_i32_8 : i32
    scf.if %16 {
      %c0_9 = arith.constant 0 : index
      %c0_10 = arith.constant 0 : index
      %17 = vector.load %arg5[%c0_9, %c0_10] : memref<8x1xf32, #tpu.memory_space<vmem>>, vector<8x1xf32>
      %cst_11 = arith.constant dense<0.000000e+00> : vector<1xf32>
      %18 = vector.multi_reduction <add>, %17, %cst_11 [0] : vector<8x1xf32> to vector<1xf32>
      %19 = vector.shape_cast %18 : vector<1xf32> to vector<1x1xf32>
      %cst_12 = arith.constant 0.020833334 : f32
      %20 = vector.broadcast %cst_12 : f32 to vector<1x1xf32>
      %21 = arith.mulf %19, %20 : vector<1x1xf32>
      %c0_13 = arith.constant 0 : index
      %c0_14 = arith.constant 0 : index
      %c0_15 = arith.constant 0 : index
      %22 = vector.load %arg4[%c0_13, %c0_14, %c0_15] : memref<1x1x1xf32, #tpu.memory_space<vmem>>, vector<1x1x1xf32>
      %23 = vector.shape_cast %22 : vector<1x1x1xf32> to vector<1x1xf32>
      %24 = vector.shape_cast %21 : vector<1x1xf32> to vector<1x1x1xf32>
      tpu.vector_store %arg4[%c0_13, %c0_14, %c0_15], %24 {strides = array<i32>} : memref<1x1x1xf32, #tpu.memory_space<vmem>>, vector<1x1x1xf32>,
    } else {
    }
    return
  }
  func.func @transform_0(%arg0: i32, %arg1: i32) -> (i32, i32) {
    %c1_i32 = arith.constant 1 : i32
    %0 = arith.muli %arg0, %c1_i32 : i32
    %1 = arith.addi %0, %arg1 : i32
    %c0_i32 = arith.constant 0 : i32
    %2 = arith.minsi %1, %c0_i32 : i32
    %c0_i32_0 = arith.constant 0 : i32
    %c0_i32_1 = arith.constant 0 : i32
    return %2, %c0_i32_0 : i32, i32
  }
  func.func @transform_1(%arg0: i32, %arg1: i32) -> (i32, i32) {
    %c1_i32 = arith.constant 1 : i32
    %0 = arith.muli %arg0, %c1_i32 : i32
    %1 = arith.addi %0, %arg1 : i32
    %c0_i32 = arith.constant 0 : i32
    %2 = arith.minsi %1, %c0_i32 : i32
    %c0_i32_0 = arith.constant 0 : i32
    %c0_i32_1 = arith.constant 0 : i32
    return %2, %c0_i32_0 : i32, i32
  }
  func.func @transform_2(%arg0: i32, %arg1: i32) -> (i32, i32, i32) {
    %c0_i32 = arith.constant 0 : i32
    %c0_i32_0 = arith.constant 0 : i32
    %c0_i32_1 = arith.constant 0 : i32
    return %arg0, %c0_i32, %c0_i32_0 : i32, i32, i32
  }
}

</mosaic_0001>

<bundles_post_ra>
// kernel: tpu_custom_call.1
= control target key start
LH: loop header
LB: loop body
LE: loop exit
PB: predicated region body
PF: predicated region fallthrough
CT: control target
= control target key end

     0   :  { %7 = vsyncpa [#allocation4], 0  ;;  %s422_s0 = inlined_call_operand.hbm [shape: f32[16,32], index: 0, kind: input, shape index: {}]   ;;  %s423_s1 = inlined_call_operand.hbm [shape: s32[16,1], index: 1, kind: input, shape index: {}]   ;;  %s424_s2 = inlined_call_operand.hbm [shape: f32[1,1,1], index: 2, kind: output, shape index: {}]  }
   0x1   :  { %8 = vsyncpa [#allocation7], 0 }
   0x2   :  { %9 = vsyncpa [#allocation5], 0  ;;  %s326_s9 = smov [#allocation3]   ;;  %s238_s13 = scalar_lea.hbm %s422_s0, 256 }
   0x3   :  { %s21_s10 = sshll.u32 %s326_s9, 4  ;;  %p239_p0 = scmp.ne.s32.totalorder %s422_s0, %s238_s13  ;;  %s22_s10 = int_to_ptr.vmem [resolvable:$true] %s21_s10 }
   0x4   :  { %p242_p1 = scmp.lt.u32.totalorder %s238_s13, %s422_s0 }
   0x6   :  { %p244_p2 = pnand %p242_p1, %p239_p0 }
   0x8   :  { %247 = shalt.err (!%p244_p2)
}
   0x9   :  { %s248_s18 = scalar_lea.vmem %s22_s10, 256  ;;  %p253_p4 = scmp.lt.s32.totalorder %s22_s10, %s22_s10 }
   0xa   :  { %p249_p3 = scmp.ne.s32.totalorder %s22_s10, %s248_s18  ;;  %p254_p5 = scmp.lt.s32.totalorder %s248_s18, %s248_s18 }
   0xc   :  { %p255_p6 = por %p254_p5, %p253_p4 }
   0xe   :  { %p256_p7 = pnand %p255_p6, %p249_p3 }
  0x10   :  { %259 = shalt.err (!%p256_p7)
}
  0x11   :  { %s327_s19 = smov 128   ;;  %s328_s20 = smov 8  }
  0x12   :  { %27 = dma.hbm_to_vmem [thread:$0]  %s422_s0, 256, %s22_s10, [#allocation4], %s327_s19, %s327_s19, %s328_s20  }
  0x13   :  { %s329_s23 = smov [#allocation6]   ;;  %s260_s27 = scalar_lea.hbm %s423_s1, 256 }
  0x14   :  { %s39_s24 = sshll.u32 %s329_s23, 4  ;;  %p261_p8 = scmp.ne.s32.totalorder %s423_s1, %s260_s27  ;;  %s40_s24 = int_to_ptr.vmem [resolvable:$true] %s39_s24 }
  0x15   :  { %p264_p9 = scmp.lt.u32.totalorder %s260_s27, %s423_s1 }
  0x17   :  { %p266_p10 = pnand %p264_p9, %p261_p8 }
  0x19   :  { %269 = shalt.err (!%p266_p10)
}
  0x1a   :  { %s270_s4 = scalar_lea.vmem %s40_s24, 256  ;;  %p275_p12 = scmp.lt.s32.totalorder %s40_s24, %s40_s24 }
  0x1b   :  { %p271_p11 = scmp.ne.s32.totalorder %s40_s24, %s270_s4  ;;  %p276_p13 = scmp.lt.s32.totalorder %s270_s4, %s270_s4 }
  0x1d   :  { %p277_p0 = por %p276_p13, %p275_p12 }
  0x1f   :  { %p278_p1 = pnand %p277_p0, %p271_p11 }
  0x21   :  { %281 = shalt.err (!%p278_p1)
}
  0x22   :  { %45 = dma.hbm_to_vmem [thread:$0]  %s423_s1, 256, %s40_s24, [#allocation7], %s327_s19, %s327_s19, %s328_s20  }
  0x23   :  { %312 = dma.done.wait [#allocation4], 256  }
  0x24   :  { %313 = vsyncadd [#allocation4], 4294967040 }
  0x25   :  { %314 = dma.done.wait [#allocation7], 256  }
  0x26   :  { %315 = vsyncadd [#allocation7], 4294967040  ;;  %vm64_vm0 = vcmask 7168   ;;  %v66_v0 = vlaneseq  ;;  %v330_v1 = vmov 0.0   ;;  %v377_v4 = vmov 0.0   ;;  %s379_s6 = smov 0  }
  0x27   :  { %65 = vst.msk [vmem:[#allocation2] sm:$0xff] %vm64_vm0, %v330_v1 }
  0x28   :  { %v373_v2 = vand.u32 127, %v66_v0  ;;  %v375_v3 = vshrl.u32 %v66_v0, 7 }
  0x29 LB: > { %v331_v5 = vmov 0   ;;  %s388_s1 = sshll.u32 %s324_s6, 3  ;;  %vm88_vm1 = vcmask 261120   ;;  %s77_s6 = sadd.s32 1, %s324_s6   ;;  %s324_s6 = sphi %s379_s6, %s77_s6   ;;  %v320_v4 = vphi %v377_v4, %v425_v4  }
  0x2a   : > { %233 = vset.pattern.permute.xlu0 %v331_v5  ;;  %s80_s7 = scalar_lea.vmem [#allocation3], %s388_s1  ;;  %s82_s8 = scalar_lea.vmem [#allocation6], %s388_s1  ;;  %v154_v49 = vstv %s388_s1 }
  0x2b   : > { %v81_v6 = vld [vmem:[%s80_s7] sm:$0xff]  ;;  %v155_v53 = vadd.s32 %v154_v49, %v375_v3  ;;  %p74_p2 = scmp.ge.s32.totalorder %s77_s6, 2  }
  0x2c   : > { %v89_v7 = vsel %vm88_vm1, %v81_v6, -inf  ;;  %v83_v8 = vld [vmem:[%s82_s8] sm:$0xff]  ;;  %s332_s9 = smov (%p74_p2), [#allocation8]   ;;  %vm175_vm11 = vcmask (%p74_p2), 0  }
  0x2d   : > { %90 = vmax.xlane.f32.xlu0 %v89_v7  ;;  %vm156_vm10 = vcmp.lt.s32.totalorder %v155_v53, 16  ;;  %s183_s10 = sshll.u32 (%p74_p2), %s332_s9, 4  ;;  %s184_s10 = int_to_ptr.vmem [resolvable:$true] %s183_s10 }
  0x2e   :  { %v159_v62 = vld [vmem:[#allocation2] sm:$0xff] (%p74_p2)  ;;  %s282_s11 = scalar_lea.vmem (%p74_p2), %s184_s10, 16  ;;  %s286_s12 = scalar_lea.vmem (%p74_p2), %s184_s10, 32 }
  0x2f   :  { %p283_p3 = scmp.ne.s32.totalorder (%p74_p2), %s184_s10, %s282_s11  ;;  %p287_p4 = scmp.lt.s32.totalorder (%p74_p2), %s184_s10, %s184_s10 }
  0x30   :  { %p288_p5 = scmp.lt.s32.totalorder (%p74_p2), %s286_s12, %s282_s11 }
  0x32   :  { %p289_p6 = por (%p74_p2), %p288_p5, %p287_p4 }
  0x34   :  { %p290_p7 = pnand (%p74_p2), %p289_p6, %p283_p3 }
  0x43   : > { %85 = vperm.xlu0 %233, %v83_v8  }
  0xba   : > { %v91_v9 = vpop.xlane.xlu0 %90 }
  0xbb   : > { %v92_v10 = vsub.f32 %v81_v6, %v91_v9 }
  0xbd   : > { %v93_v11 = vmul.f32 1.442695, %v92_v10 }
  0xbf   : > { %234 = vpow2.f32 %v93_v11 }
  0xc2   : > { %v86_v12 = vpop.permute.xlu0 %85 }
  0xc3   : > { %vm87_vm2 = vcmp.eq.s32.totalorder %v373_v2, %v86_v12 }
  0xc9   : > { %v235_v13 = vpop.eup %234 }
  0xca   : > { %v102_v14 = vsel %vm87_vm2, %v235_v13, 0.0  ;;  %v106_v15 = vsel %vm87_vm2, -1e+30, %v235_v13  ;;  %v95_v23 = vsel %vm88_vm1, %v235_v13, 0.0 }
  0xcb   : > { %v107_v16 = vsel %vm88_vm1, %v106_v15, -inf  ;;  %v103_v24 = vsel %vm88_vm1, %v102_v14, 0.0 }
  0xcc   : > { %108 = vmax.xlane.f32.xlu1 %v107_v16 }
 0x159   : > { %v109_v17 = vpop.xlane.xlu1 %108 }
 0x15a   : > { %vm116_vm3 = vcmp.eq.f32.partialorder %v106_v15, %v109_v17  ;;  %vm114_vm6 = vcmp.gt.f32.partialorder %v109_v17, -5e+29 }
 0x15b   : > { %v117_v18 = vsel %vm116_vm3, -1e+30, %v106_v15 }
 0x15c   : > { %v119_v19 = vsel %vm88_vm1, %v117_v18, -inf }
 0x15d   : > { %120 = vmax.xlane.f32.xlu1 %v119_v19 }
 0x1ea   : > { %v121_v20 = vpop.xlane.xlu1 %120 }
 0x1eb   : > { %vm128_vm4 = vcmp.eq.f32.partialorder %v117_v18, %v121_v20  ;;  %vm126_vm7 = vcmp.gt.f32.partialorder %v121_v20, -5e+29 }
 0x1ec   : > { %v129_v21 = vsel %vm128_vm4, -1e+30, %v117_v18 }
 0x1ed   : > { %v131_v22 = vsel %vm88_vm1, %v129_v21, -inf }
 0x1ee   : > { %132 = vmax.xlane.f32.xlu1 %v131_v22 }
 0x1f2   : > { %96 = vadd.xlane.f32.xlu1 %v95_v23 }
 0x1f6   : > { %104 = vadd.xlane.f32.xlu1 %v103_v24 }
 0x27b   : > { %v133_v25 = vpop.xlane.xlu1 %132 }
 0x27c   : > { %vm140_vm5 = vcmp.eq.f32.partialorder %v129_v21, %v133_v25  ;;  %vm138_vm8 = vcmp.gt.f32.partialorder %v133_v25, -5e+29 }
 0x27d   : > { %v141_v26 = vsel %vm140_vm5, -1e+30, %v129_v21 }
 0x27e   : > { %v143_v27 = vsel %vm88_vm1, %v141_v26, -inf }
 0x27f   : > { %144 = vmax.xlane.f32.xlu1 %v143_v27  ;;  %v97_v28 = vpop.xlane.xlu1 %96 }
 0x280   : > { %236 = vrcp.f32 %v97_v28 }
 0x283   : > { %v105_v32 = vpop.xlane.xlu1 %104 }
 0x284   : > { %v110_v34 = vsub.f32 %v109_v17, %v105_v32  ;;  %v122_v35 = vsub.f32 %v121_v20, %v105_v32  ;;  %v134_v40 = vsub.f32 %v133_v25, %v105_v32 }
 0x28a   : > { %v237_v29 = vpop.eup %236 }
 0x28b   : > { %v99_v30 = vmul.f32 %v237_v29, %v97_v28 }
 0x28d   : > { %v100_v31 = vsub.f32 2.0, %v99_v30 }
 0x28f   : > { %v101_v33 = vmul.f32 %v237_v29, %v100_v31 }
 0x291   : > { %v111_v36 = vmul.f32 %v110_v34, %v101_v33  ;;  %v123_v37 = vmul.f32 %v122_v35, %v101_v33  ;;  %v135_v41 = vmul.f32 %v134_v40, %v101_v33 }
 0x293   : > { %v112_v38 = vadd.f32 1.0, %v111_v36  ;;  %v124_v39 = vadd.f32 1.0, %v123_v37  ;;  %v136_v44 = vadd.f32 1.0, %v135_v41 }
 0x295   : > { %v113_v42 = vmul.f32 %v112_v38, %v112_v38  ;;  %v125_v43 = vmul.f32 %v124_v39, %v124_v39  ;;  %v137_v50 = vmul.f32 %v136_v44, %v136_v44 }
 0x297   : > { %v115_v46 = vsel %vm114_vm6, %v113_v42, 0.0  ;;  %v127_v47 = vsel %vm126_vm7, %v125_v43, 0.0  ;;  %v139_v55 = vsel %vm138_vm8, %v137_v50, 0.0 }
 0x298   : > { %v130_v52 = vadd.f32 %v127_v47, %v115_v46 }
 0x29a   : > { %v142_v57 = vadd.f32 %v139_v55, %v130_v52 }
 0x30c   : > { %v145_v45 = vpop.xlane.xlu1 %144 }
 0x30d   : > { %v146_v48 = vsub.f32 %v145_v45, %v105_v32  ;;  %vm150_vm9 = vcmp.gt.f32.partialorder %v145_v45, -5e+29 }
 0x30f   : > { %v147_v51 = vmul.f32 %v146_v48, %v101_v33 }
 0x311   : > { %v148_v54 = vadd.f32 1.0, %v147_v51 }
 0x313   : > { %v149_v56 = vmul.f32 %v148_v54, %v148_v54 }
 0x315   : > { %v151_v58 = vsel %vm150_vm9, %v149_v56, 0.0  ;;  %76 = sbr.rel (!%p74_p2) target bundleno = 41 (0x29), region = 55 }
 0x316   : > { %v152_v59 = vadd.f32 %v151_v58, %v142_v57 }
 0x318   : > { %v157_v60 = vsel %vm156_vm10, %v152_v59, 0.0 }
 0x319   : > { %v158_v61 = vadd.f32 %v320_v4, %v157_v60  }
 0x31b   : > { %v425_v4 = vmov %v158_v61  ;;  %v160_v63 = vadd.f32 (%p74_p2), %v159_v62, %v158_v61 }
 0x31d   :  { %162 = vst.msk [vmem:[#allocation2] sm:$0xff] %vm64_vm0, %v160_v63 }
 0x324   :  { %v166_v0 = vld [vmem:[#allocation2] sm:$0xff] }
 0x325   :  { %v167_v1 = vsel %vm64_vm0, %v166_v0, 0.0 }
 0x326   :  { %v168_v5 = vrot.slane %v167_v1, 4 }
 0x328   :  { %v169_v6 = vadd.f32 %v168_v5, %v167_v1 }
 0x32a   :  { %v170_v7 = vrot.slane %v169_v6, 2 }
 0x32c   :  { %v171_v8 = vadd.f32 %v170_v7, %v169_v6 }
 0x32e   :  { %v172_v4 = vrot.slane %v171_v8, 1 }
 0x330   :  { %v173_v9 = vadd.f32 %v172_v4, %v171_v8 }
 0x332   :  { %v174_v10 = vmul.f32 0.020833334, %v173_v9 }
 0x334   :  { %176 = vst.msk [vmem:[#allocation8] sm:$0x1] %vm175_vm11, %v174_v10 }
 0x335   :  { %293 = shalt.err (!%p290_p7)
}
 0x336   :  { %s294_s15 = scalar_lea.hbm %s424_s2, 16 }
 0x337   :  { %p295_p8 = scmp.ne.s32.totalorder %s424_s2, %s294_s15  ;;  %p298_p9 = scmp.lt.u32.totalorder %s294_s15, %s424_s2 }
 0x339   :  { %p300_p10 = pnand %p298_p9, %p295_p8 }
 0x33b   :  { %303 = shalt.err (!%p300_p10)
}
 0x33c   :  { %186 = dma.vmem_to_hbm [thread:$0]  %s184_s10, 16, %s424_s2, [#allocation5]  }
 0x33d   :  { %316 = dma.done.wait [#allocation5], 16  }
 0x33e   :  { %317 = vsyncadd [#allocation5], 4294967280 }
 0x33f   :  { %190 = vsyncpa [#allocation4], 1 }
 0x340   :  { %191 = vsyncpa [#allocation7], 1 }
 0x341   :  { %192 = vsyncpa [#allocation5], 1 }

</bundles_post_ra>
